<compile_context>
chip_gen: v7x
topology: tpu7x:2x2x1
jax: 0.10.0
libtpu: 0.0.40
codegen_flags: <defaults>
</compile_context>

<pallas_src>
import functools
import math

import numpy as np
import jax
import jax.numpy as jnp
from jax.experimental import pallas as pl
from jax.experimental.pallas import tpu as pltpu


def _round_up(x: int, m: int) -> int:
    return ((x + m - 1) // m) * m


def _build_tables(dim: int, half: int, max_period: int, k: int, k_cols: int):
    """Host-side constant tables (float64 math, rounded once to f32).

    freq table : block-diagonal (k_cols, k*dim); row j carries
                 max_period * [freq, freq] on lanes [j*dim, (j+1)*dim).
                 For k == 1 it degenerates to a (1, dim) row vector.
    phase      : (1, k*dim); 0 on each sin half, pi/2 on each cos half
                 (cos(x) == sin(x + pi/2) -> one full-width sin + store).
    """
    scale = math.log(max_period) / (half - 1)
    freqs = np.exp(-scale * np.arange(half, dtype=np.float64))
    freqs_full = np.concatenate([freqs, freqs]) * float(max_period)          # (dim,)
    phase_seg = np.concatenate([np.zeros(half), np.full(half, np.pi / 2)])   # (dim,)

    lanes = k * dim
    if k == 1:
        table = freqs_full.reshape(1, dim)
    else:
        table = np.zeros((k_cols, lanes), dtype=np.float64)
        for j in range(k):
            table[j, j * dim:(j + 1) * dim] = freqs_full
    phase = np.tile(phase_seg, k).reshape(1, lanes)
    return (jnp.asarray(table, dtype=jnp.float32),
            jnp.asarray(phase, dtype=jnp.float32))


def _sinusoidal_kernel(time_ref, table_ref, phase_ref, out_ref, *, use_mxu: bool):
    # time_ref : (tb, k_cols)      f32 packed timesteps (zero-padded columns)
    # table_ref: (k_cols, lanes)   f32 block-diagonal frequency table (resident)
    # phase_ref: (1, lanes)        f32 0 / pi/2 phase offsets (resident)
    # out_ref  : (tb, lanes)       f32 output tile, lanes % 128 == 0 -> unmasked vst
    if use_mxu:
        # MXU (idle otherwise) broadcasts each packed timestep onto its dim-wide
        # lane segment and applies max_period*freq in one pass; HIGHEST keeps f32.
        args = jnp.dot(time_ref[...], table_ref[...],
                       preferred_element_type=jnp.float32,
                       precision=jax.lax.Precision.HIGHEST)
    else:
        # k == 1: plain lane-broadcast outer product (tb,1) * (1,dim).
        args = time_ref[...] * table_ref[...]
    out_ref[...] = jnp.sin(args + phase_ref[...])


def sinusoidal_position_embeddings(time: jax.Array, dim: int,
                                   max_period: int = 10000,
                                   block_rows: int = 1024) -> jax.Array:
    """time: (B,) float timesteps -> (B, dim) float32 embeddings."""
    assert dim % 2 == 0, "dim must be even"
    half = dim // 2
    assert half > 1, "dim must be >= 4 (avoids division by zero in half - 1)"
    b = int(time.shape[0])
    assert b >= 1

    # Lane-dense repack factor: pack k consecutive timesteps per output row so the
    # row width k*dim is a multiple of 128 (full lanes, unmasked stores).
    k = 128 // math.gcd(dim, 128)
    lanes = k * dim
    use_mxu = k > 1
    k_cols = _round_up(k, 8) if use_mxu else 1

    # ---- tile selection: minimal padding, >=2 steps for v7x megacore, VMEM cap ----
    n_rows = pl.cdiv(b, k)                                    # packed rows needed
    vmem_rows = max(8, ((8 * 1024 * 1024) // (2 * lanes * 4)) // 8 * 8)
    blk = max(8, min(block_rows, vmem_rows))
    n_steps = pl.cdiv(n_rows, blk)
    tb = _round_up(pl.cdiv(n_rows, n_steps), 8)               # waste < 8 rows/step
    if n_steps == 1 and tb >= 16:                             # let both v7x TCs work
        n_steps = 2
        tb = _round_up(pl.cdiv(n_rows, n_steps), 8)
    rows_pad = n_steps * tb

    # ---- inputs ----
    t = time.reshape(b).astype(jnp.float32)
    total = rows_pad * k
    if total != b:
        t = jnp.pad(t, (0, total - b))
    t = t.reshape(rows_pad, k)
    if k_cols != k:
        t = jnp.pad(t, ((0, 0), (0, k_cols - k)))             # zero cols match zero rows in table

    table, phase = _build_tables(dim, half, max_period, k, k_cols)

    elems = rows_pad * lanes
    cost = pl.CostEstimate(
        flops=2 * rows_pad * k_cols * lanes + 2 * elems,
        transcendentals=elems,
        bytes_accessed=4 * (rows_pad * k_cols + k_cols * lanes + lanes + elems),
    )

    out = pl.pallas_call(
        functools.partial(_sinusoidal_kernel, use_mxu=use_mxu),
        out_shape=jax.ShapeDtypeStruct((rows_pad, lanes), jnp.float32),
        grid_spec=pltpu.PrefetchScalarGridSpec(
            num_scalar_prefetch=0,
            grid=(n_steps,),
            in_specs=[
                pl.BlockSpec((tb, k_cols), lambda i: (i, 0)),      # packed timesteps
                pl.BlockSpec((k_cols, lanes), lambda i: (0, 0)),   # freq table (resident)
                pl.BlockSpec((1, lanes), lambda i: (0, 0)),        # phase table (resident)
            ],
            out_specs=pl.BlockSpec((tb, lanes), lambda i: (i, 0)),
        ),
        compiler_params=pltpu.CompilerParams(
            dimension_semantics=("parallel",),
        ),
        cost_estimate=cost,
    )(t, table, phase)

    # Undo the lane-dense packing; padded rows fall off in the final slice.
    return out.reshape(rows_pad * k, dim)[:b]


def _reference(time, dim, max_period=10000):
    # Faithful JAX mirror of the torch module's forward.
    half = dim // 2
    t = time.astype(jnp.float32) * max_period
    freqs = jnp.exp(jnp.arange(half, dtype=jnp.float32) *
                    -(math.log(max_period) / (half - 1)))
    emb = t[:, None] * freqs[None, :]
    return jnp.concatenate([jnp.sin(emb), jnp.cos(emb)], axis=-1)


if __name__ == "__main__":
    key = jax.random.PRNGKey(0)
    B, DIM, MAX_PERIOD = 8, 32, 10000
    # diffusion-style normalized timesteps in [0, 1)
    time = jax.random.uniform(key, (B,), dtype=jnp.float32)

    out = jax.block_until_ready(sinusoidal_position_embeddings(time, DIM, MAX_PERIOD))
    ref = jax.block_until_ready(_reference(time, DIM, MAX_PERIOD))

    assert out.shape == (B, DIM) and out.dtype == jnp.float32

    # Conditioning-aware tolerance: the sin/cos argument reaches ~max_period, where a
    # few ulps of f32 argument rounding (different but equally valid evaluation
    # orders, plus the cos(x)==sin(x+pi/2) formulation) legitimately move the result
    # by O(1e-3).  Real bugs produce O(1) errors, far above this bound.
    half = DIM // 2
    freqs64 = np.exp(-math.log(MAX_PERIOD) / (half - 1) *
                     np.arange(half, dtype=np.float64))
    args64 = np.abs(np.asarray(time, np.float64))[:, None] * MAX_PERIOD * freqs64
    tol = 1e-4 + 64 * 2.0 ** -24 * np.concatenate([args64, args64], axis=-1)
    err = np.abs(np.asarray(out, np.float64) - np.asarray(ref, np.float64))
    assert np.all(err <= tol), f"max err {err.max():.3e} exceeds tolerance"
    print("KERNEL_OK")
</pallas_src>

<mosaic_0001>
module attributes {stable_mosaic.version = 11 : i64} {
  func.func @_sinusoidal_kernel(%arg0: i32, %arg1: memref<8x8xf32, #tpu.memory_space<vmem>>, %arg2: memref<8x128xf32, #tpu.memory_space<vmem>>, %arg3: memref<1x128xf32, #tpu.memory_space<vmem>>, %arg4: memref<8x128xf32, #tpu.memory_space<vmem>>) attributes {dimension_semantics = [#tpu.dimension_semantics<parallel>], iteration_bounds = array<i64: 1>, scalar_prefetch = 0 : i64, scratch_operands = 0 : i64, tpu.core_type = #tpu.core_type<tc>, window_params = [{transform_indices = @transform_0, window_bounds = array<i64: 8, 8>}, {pipeline_mode = #tpu.pipeline_mode<synchronous>, transform_indices = @transform_1, window_bounds = array<i64: 8, 128>}, {pipeline_mode = #tpu.pipeline_mode<synchronous>, transform_indices = @transform_2, window_bounds = array<i64: 1, 128>}, {transform_indices = @transform_3, window_bounds = array<i64: 8, 128>}]} {
    %c0 = arith.constant 0 : index
    %c0_0 = arith.constant 0 : index
    %0 = vector.load %arg1[%c0, %c0_0] : memref<8x8xf32, #tpu.memory_space<vmem>>, vector<8x8xf32>
    %c0_1 = arith.constant 0 : index
    %c0_2 = arith.constant 0 : index
    %1 = vector.load %arg2[%c0_1, %c0_2] : memref<8x128xf32, #tpu.memory_space<vmem>>, vector<8x128xf32>
    %cst = arith.constant dense<0.000000e+00> : vector<8x128xf32>
    %2 = tpu.matmul %0, %1, %cst {dimension_numbers = #tpu.dot_dimension_numbers<[1], [0], [0], [1], [0, 0, 1, 1], [], []>, precision = #tpu.contract_precision<fp32>} : vector<8x8xf32>, vector<8x128xf32>, vector<8x128xf32> -> vector<8x128xf32>
    %c0_3 = arith.constant 0 : index
    %c0_4 = arith.constant 0 : index
    %3 = vector.load %arg3[%c0_3, %c0_4] : memref<1x128xf32, #tpu.memory_space<vmem>>, vector<1x128xf32>
    %4 = vector.broadcast %3 : vector<1x128xf32> to vector<8x128xf32>
    %5 = arith.addf %2, %4 : vector<8x128xf32>
    %6 = math.sin %5 : vector<8x128xf32>
    %c0_5 = arith.constant 0 : index
    %c0_6 = arith.constant 0 : index
    %7 = vector.load %arg4[%c0_5, %c0_6] : memref<8x128xf32, #tpu.memory_space<vmem>>, vector<8x128xf32>
    tpu.vector_store %arg4[%c0_5, %c0_6], %6 {strides = array<i32>} : memref<8x128xf32, #tpu.memory_space<vmem>>, vector<8x128xf32>,
    return
  }
  func.func @transform_0(%arg0: i32) -> (i32, i32) {
    %c0_i32 = arith.constant 0 : i32
    %c0_i32_0 = arith.constant 0 : i32
    return %arg0, %c0_i32 : i32, i32
  }
  func.func @transform_1(%arg0: i32) -> (i32, i32) {
    %c0_i32 = arith.constant 0 : i32
    %c0_i32_0 = arith.constant 0 : i32
    %c0_i32_1 = arith.constant 0 : i32
    return %c0_i32, %c0_i32_0 : i32, i32
  }
  func.func @transform_2(%arg0: i32) -> (i32, i32) {
    %c0_i32 = arith.constant 0 : i32
    %c0_i32_0 = arith.constant 0 : i32
    %c0_i32_1 = arith.constant 0 : i32
    return %c0_i32, %c0_i32_0 : i32, i32
  }
  func.func @transform_3(%arg0: i32) -> (i32, i32) {
    %c0_i32 = arith.constant 0 : i32
    %c0_i32_0 = arith.constant 0 : i32
    return %arg0, %c0_i32 : i32, i32
  }
}

</mosaic_0001>

<bundles_post_ra>
// kernel: tpu_custom_call.1
= control target key start
LH: loop header
LB: loop body
LE: loop exit
PB: predicated region body
PF: predicated region fallthrough
CT: control target
= control target key end

     0   :  { %8 = vsyncpa [#allocation3], 0  ;;  %s864_s0 = inlined_call_operand.hbm [shape: f32[8,8], index: 0, kind: input, shape index: {}]   ;;  %s865_s1 = inlined_call_operand.hbm [shape: f32[8,128], index: 1, kind: input, shape index: {}]   ;;  %s866_s2 = inlined_call_operand.vmem [shape: f32[1,128], index: 2, kind: input, shape index: {}]   ;;  %s867_s3 = inlined_call_operand.hbm [shape: f32[8,128], index: 3, kind: output, shape index: {}]  }
   0x1   :  { %9 = vsyncpa [#allocation6], 0 }
   0x2   :  { %10 = vsyncpa [#allocation4], 0  ;;  %s767_s12 = smov [#allocation2]   ;;  %s768_s14 = smov [#allocation5]  }
   0x3   :  { %s17_s13 = sshll.u32 %s767_s12, 4  ;;  %s27_s15 = sshll.u32 %s768_s14, 4  ;;  %s18_s13 = int_to_ptr.vmem [resolvable:$true] %s17_s13  ;;  %s28_s15 = int_to_ptr.vmem [resolvable:$true] %s27_s15 }
   0x4   :  { %s695_s18 = scalar_lea.hbm %s864_s0, 128 }
   0x5   :  { %p696_p0 = scmp.ne.s32.totalorder %s864_s0, %s695_s18  ;;  %p699_p1 = scmp.lt.u32.totalorder %s695_s18, %s864_s0 }
   0x7   :  { %p701_p2 = pnand %p699_p1, %p696_p0 }
   0x9   :  { %704 = shalt.err (!%p701_p2)
}
   0xa   :  { %s705_s23 = scalar_lea.vmem %s18_s13, 128  ;;  %p710_p4 = scmp.lt.s32.totalorder %s18_s13, %s18_s13 }
   0xb   :  { %p706_p3 = scmp.ne.s32.totalorder %s18_s13, %s705_s23  ;;  %p711_p5 = scmp.lt.s32.totalorder %s705_s23, %s705_s23 }
   0xd   :  { %p712_p6 = por %p711_p5, %p710_p4 }
   0xf   :  { %p713_p7 = pnand %p712_p6, %p706_p3 }
  0x11   :  { %716 = shalt.err (!%p713_p7)
}
  0x12   :  { %20 = dma.hbm_to_vmem [thread:$0]  %s864_s0, 128, %s18_s13, [#allocation3]  }
  0x13   :  { %s717_s28 = scalar_lea.hbm %s865_s1, 128 }
  0x14   :  { %p718_p8 = scmp.ne.s32.totalorder %s865_s1, %s717_s28  ;;  %p721_p9 = scmp.lt.u32.totalorder %s717_s28, %s865_s1 }
  0x16   :  { %p723_p10 = pnand %p721_p9, %p718_p8 }
  0x18   :  { %726 = shalt.err (!%p723_p10)
}
  0x19   :  { %s727_s6 = scalar_lea.vmem %s28_s15, 128  ;;  %p732_p12 = scmp.lt.s32.totalorder %s28_s15, %s28_s15 }
  0x1a   :  { %p728_p11 = scmp.ne.s32.totalorder %s28_s15, %s727_s6  ;;  %p733_p13 = scmp.lt.s32.totalorder %s727_s6, %s727_s6 }
  0x1c   :  { %p734_p0 = por %p733_p13, %p732_p12 }
  0x1e   :  { %p735_p1 = pnand %p734_p0, %p728_p11 }
  0x20   :  { %738 = shalt.err (!%p735_p1)
}
  0x21   :  { %30 = dma.hbm_to_vmem [thread:$0]  %s865_s1, 128, %s28_s15, [#allocation6]  }
  0x22   :  { %761 = dma.done.wait [#allocation3], 128  }
  0x23   :  { %762 = vsyncadd [#allocation3], 4294967168 }
  0x24   :  { %763 = dma.done.wait [#allocation6], 128  }
  0x25   :  { %764 = vsyncadd [#allocation6], 4294967168  ;;  %v769_v0 = vmov 0.0   ;;  %vm770_vm0 = vmmov 0   ;;  %vm48_vm1 = vcmask 64512   ;;  %v40_v1 = vld [vmem:[#allocation5] sm:$0xff] }
  0x26   :  { %651 = vmatprep.subr.mxu0 %v769_v0  ;;  %653 = vmatprep.mubr.msk.f32.mxu0 %vm770_vm0, %v769_v0  ;;  %v39_v2 = vld [vmem:[#allocation2] sm:$0xff]  ;;  %v53_v3 = vand.u32 4294901760, %v40_v1  ;;  %v771_v32 = vmov 2102212464   ;;  %v772_v34 = vmov 920167782  }
  0x27   :  { %636 = vmatprep.subr.mxu1 %v769_v0  ;;  %638 = vmatprep.mubr.msk.f32.mxu1 %vm770_vm0, %v769_v0  ;;  %v50_v4 = vsel %vm48_vm1, %v39_v2, 0  ;;  %v619_v16 = vld [vmem:[%s866_s2] ss:$0 sm:$0xff]  ;;  %v773_v38 = vmov 1326507024   ;;  %s777_s2 = smov [#allocation7]  }
  0x28   :  { %v118_v5 = vand.u32 4294901760, %v50_v4  ;;  %v130_v6 = vsub.f32 %v40_v1, %v53_v3  ;;  %652 = vmatpush3.msra.mxu0 %v53_v3  ;;  %637 = vmatpush3.msra.mxu1 %v53_v3  ;;  %v774_v40 = vmov 683565275   ;;  %v775_v42 = vmov 2475754826   ;;  %s609_s9 = sshll.u32 %s777_s2, 4  ;;  %s610_s9 = int_to_ptr.vmem [resolvable:$true] %s609_s9 }
  0x29   :  { %641 = vmatprep.subr.mxu1 %v769_v0  ;;  %656 = vmatprep.subr.mxu0 %v769_v0  ;;  %v776_v45 = vmov 2131351028   ;;  %s739_s10 = scalar_lea.vmem %s610_s9, 128  ;;  %p744_p3 = scmp.lt.s32.totalorder %s610_s9, %s610_s9 }
  0x2a   :  { %v119_v7 = vsub.f32 %v50_v4, %v118_v5  ;;  %v131_v8 = vand.u32 4294901760, %v130_v6  ;;  %p740_p2 = scmp.ne.s32.totalorder %s610_s9, %s739_s10  ;;  %p745_p4 = scmp.lt.s32.totalorder %s739_s10, %s739_s10 }
  0x2c   :  { %v120_v9 = vand.u32 4294901760, %v119_v7  ;;  %v132_v10 = vsub.f32 %v130_v6, %v131_v8  ;;  %p746_p5 = por %p745_p4, %p744_p3 }
  0x2e   :  { %654 = vmatmul.mubr.f32.vlgmr.msra.gmra.mrb[0].mxu0 %v120_v9  ;;  %v121_v11 = vsub.f32 %v119_v7, %v120_v9  ;;  %v133_v12 = vand.u32 4294901760, %v132_v10  ;;  %p747_p6 = pnand %p746_p5, %p740_p2 }
  0x2f   :  { %657 = vmatpush3.msra.mxu0 %v131_v8  ;;  %658 = vmatprep.mubr.msk.f32.mxu0 %vm770_vm0, %v769_v0 }
  0x30   :  { %v122_v13 = vand.u32 4294901760, %v121_v11  ;;  %661 = vmatprep.subr.mxu0 %v769_v0 }
  0x32   :  { %639 = vmatmul.mubr.f32.vlgmr.msra.gmra.mrb[0].mxu1 %v122_v13 }
  0x33   :  { %642 = vmatpush3.msra.mxu1 %v133_v12  ;;  %643 = vmatprep.mubr.msk.f32.mxu1 %vm770_vm0, %v769_v0 }
  0x34   :  { %646 = vmatprep.subr.mxu1 %v769_v0 }
  0x36   :  { %659 = vmatmul.mubr.f32.vlgmr.msra.gmra.mrb[0].mxu0 %v118_v5 }
  0x37   :  { %662 = vmatpush3.msra.mxu0 %v53_v3  ;;  %663 = vmatprep.mubr.msk.f32.mxu0 %vm770_vm0, %v769_v0 }
  0x3a   :  { %644 = vmatmul.mubr.f32.vlgmr.msra.gmra.mrb[0].mxu1 %v118_v5 }
  0x3b   :  { %647 = vmatpush3.msra.mxu1 %v130_v6  ;;  %648 = vmatprep.mubr.msk.f32.mxu1 %vm770_vm0, %v769_v0 }
  0x3e   :  { %664 = vmatmul.mubr.f32.vlgmr.msra.gmra.mrb[0].mxu0 %v118_v5 }
  0x42   :  { %649 = vmatmul.mubr.f32.vlgmr.msra.gmra.mrb[0].mxu1 %v119_v7 }
 0x111   :  { %v494_v14 = vpop.f32.mrb[0].mxu0 }
 0x112   :  { %v665_v15 = vpop.f32.mrb[1].mxu0 }
 0x115   :  { %v274_v17 = vpop.f32.mrb[0].mxu1 }
 0x116   :  { %v666_v18 = vadd.f32 %v619_v16, %v274_v17  ;;  %v650_v19 = vpop.f32.mrb[1].mxu1 }
 0x118   :  { %v831_v20 = vadd.f32 %v666_v18, %v494_v14 }
 0x11a   :  { %v501_v21 = vand.u32 2139095040, %v831_v20  ;;  %v498_v22 = vand.u32 2147483647, %v831_v20  ;;  %vm500_vm9 = vcmp.lt.s32.totalorder %v831_v20, 0  ;;  %vm590_vm14 = vweird.f32 %v831_v20 }
 0x11c   :  { %v502_v23 = vshrl.u32 %v501_v21, 23  ;;  %v505_v25 = vand.u32 8388607, %v498_v22  ;;  %vm499_vm10 = vcmp.le.f32.partialorder %v498_v22, 0.7853982 }
 0x11e   :  { %v620_v24 = vadd.s32 4294967169, %v502_v23  ;;  %v506_v28 = vor.u32 8388608, %v505_v25 }
 0x120   :  { %v508_v26 = vadd.s32 1, %v620_v24  ;;  %v546_v36 = vshll.u32 %v506_v28, 8 }
 0x122   :  { %vm509_vm2 = vcmp.gt.s32.totalorder %v508_v26, 0 }
 0x123   :  { %v510_v27 = vsel %vm509_vm2, %v508_v26, 0 }
 0x124   :  { %v512_v29 = vand.u32 31, %v510_v27  ;;  %v511_v30 = vshrl.u32 %v510_v27, 5 }
 0x126   :  { %v513_v31 = vsub.s32 32, %v512_v29  ;;  %v524_v33 = vshll.u32 %v771_v32, %v512_v29  ;;  %v527_v35 = vshll.u32 %v772_v34, %v512_v29  ;;  %v515_v41 = vshll.u32 %v774_v40, %v512_v29 }
 0x127   :  { %v518_v44 = vshll.u32 %v775_v42, %v512_v29  ;;  %v521_v47 = vshll.u32 %v776_v45, %v512_v29  ;;  %vm533_vm3 = vcmp.lt.s32.totalorder %v511_v30, 4  ;;  %vm530_vm4 = vcmp.lt.s32.totalorder %v511_v30, 1 }
 0x128   :  { %v525_v37 = vshrl.u32 %v772_v34, %v513_v31  ;;  %v528_v39 = vshrl.u32 %v773_v38, %v513_v31  ;;  %v516_v43 = vshrl.u32 %v775_v42, %v513_v31  ;;  %v519_v46 = vshrl.u32 %v776_v45, %v513_v31 }
 0x129   :  { %v522_v48 = vshrl.u32 %v771_v32, %v513_v31  ;;  %v514_v52 = vshrl.u32 %v774_v40, %v513_v31  ;;  %vm531_vm5 = vcmp.lt.s32.totalorder %v511_v30, 2  ;;  %vm532_vm6 = vcmp.lt.s32.totalorder %v511_v30, 3 }
 0x12a   :  { %v526_v49 = vor.u32 %v525_v37, %v524_v33  ;;  %v529_v50 = vor.u32 %v528_v39, %v527_v35  ;;  %v517_v51 = vor.u32 %v516_v43, %v515_v41  ;;  %v520_v53 = vor.u32 %v519_v46, %v518_v44 }
 0x12b   :  { %v523_v54 = vor.u32 %v522_v48, %v521_v47 }
 0x12c   :  { %v539_v55 = vsel %vm533_vm3, %v526_v49, 920167782  ;;  %v543_v56 = vsel %vm533_vm3, %v529_v50, 1326507024  ;;  %v538_v58 = vsel %vm530_vm4, %v517_v51, %v520_v53  ;;  %v534_v61 = vsel %vm530_vm4, %v514_v52, %v517_v51 }
 0x12d   :  { %v535_v57 = vsel %vm533_vm3, %v523_v54, 2102212464  ;;  %v540_v59 = vsel %vm532_vm6, %v523_v54, %v539_v55  ;;  %v542_v60 = vsel %vm530_vm4, %v520_v53, %v523_v54  ;;  %v544_v0 = vsel %vm532_vm6, %v526_v49, %v543_v56 }
 0x12e   :  { %v536_v62 = vsel %vm532_vm6, %v520_v53, %v535_v57  ;;  %v541_v63 = vsel %vm531_vm5, %v538_v58, %v540_v59  ;;  %v545_v1 = vsel %vm531_vm5, %v542_v60, %v544_v0 }
 0x12f   :  { %v837_v2 = vmul.u32.u64.low %v546_v36, %v541_v63  ;;  %v838_v3 = vmul.u32.u64.high %v546_v36, %v541_v63, %v837_v2  ;;  %v840_v4 = vmul.u32.u64.low %v546_v36, %v545_v1  ;;  %v841_v5 = vmul.u32.u64.high %v546_v36, %v545_v1, %v840_v4 }
 0x130   :  { %v537_v6 = vsel %vm531_vm5, %v534_v61, %v536_v62 }
 0x131   :  { %v556_v7 = vadd.s32 1, %v838_v3  ;;  %v553_v8 = vmul.u32 %v546_v36, %v537_v6  ;;  %vm555_vm7 = vc.u32 %v841_v5, %v837_v2  ;;  %v554_v21 = vadd.s32 %v837_v2, %v841_v5 }
 0x133   :  { %v557_v9 = vsel %vm555_vm7, %v556_v7, %v838_v3 }
 0x134   :  { %v558_v10 = vadd.s32 %v557_v9, %v553_v8 }
 0x136   :  { %v559_v11 = vadd.s32 536870912, %v558_v10 }
 0x138   :  { %v560_v12 = vshrl.u32 %v559_v11, 30 }
 0x13a   :  { %v561_v13 = vshll.u32 %v560_v12, 30  ;;  %v584_v34 = vsub.s32 4, %v560_v12 }
 0x13c   :  { %v562_v14 = vsub.s32 %v558_v10, %v561_v13  ;;  %v585_v37 = vsel %vm500_vm9, %v584_v34, %v560_v12 }
 0x13d   :  { %v587_v39 = vsel %vm499_vm10, 0, %v585_v37 }
 0x13e   :  { %v564_v15 = vsub.s32 0, %v562_v14  ;;  %v591_v40 = vadd.s32 3, %v587_v39 }
 0x140   :  { %v621_v16 = vmin.u32 %v564_v15, %v562_v14  ;;  %v592_v41 = vand.u32 3, %v591_v40 }
 0x142   :  { %v566_v17 = vclz %v621_v16  ;;  %vm597_vm11 = vcmp.eq.s32.totalorder %v592_v41, 2  ;;  %vm594_vm12 = vcmp.eq.s32.totalorder %v592_v41, 0  ;;  %vm593_vm13 = vcmp.lt.s32.totalorder %v592_v41, 2 }
 0x144   :  { %v622_v18 = vadd.s32 4294967294, %v566_v17 }
 0x146   :  { %vm623_vm8 = vcmp.lt.s32.totalorder %v622_v18, 0 }
 0x147   :  { %v569_v19 = vsel %vm623_vm8, 0, %v622_v18 }
 0x148   :  { %v570_v23 = vsub.s32 32, %v569_v19  ;;  %v574_v24 = vsub.s32 4294967266, %v569_v19  ;;  %v571_v25 = vshll.u32 %v562_v14, %v569_v19 }
 0x14a   :  { %v572_v26 = vshrl.u32 %v554_v21, %v570_v23  ;;  %v575_v27 = vadd.s32 127, %v574_v24 }
 0x14c   :  { %v573_v28 = vor.u32 %v572_v26, %v571_v25  ;;  %v576_v29 = vshll.u32 %v575_v27, 23 }
 0x14e   :  { %v577_v30 = vor.u32 4788187, %v576_v29  ;;  %v580_v32 = vcvt.s32.f32 %v573_v28 }
 0x150   :  { %v578_v31 = vand.u32 2147483647, %v577_v30 }
 0x152   :  { %v581_v33 = vmul.f32 %v580_v32, %v578_v31 }
 0x154   :  { %v582_v35 = vxor.u32 2147483648, %v581_v33 }
 0x156   :  { %v583_v36 = vsel %vm500_vm9, %v582_v35, %v581_v33 }
 0x157   :  { %v586_v38 = vsel %vm499_vm10, %v831_v20, %v583_v36 }
 0x158   :  { %691 = vcosq.f32 %v586_v38 }
 0x159   :  { %693 = vsinq.f32 %v586_v38 }
 0x162   :  { %v692_v42 = vpop.eup %691 }
 0x163   :  { %v694_v43 = vpop.eup %693  ;;  %v598_v44 = vxor.u32 2147483648, %v692_v42 }
 0x164   :  { %v595_v45 = vxor.u32 2147483648, %v694_v43 }
 0x165   :  { %v599_v46 = vsel %vm597_vm11, %v598_v44, %v694_v43 }
 0x166   :  { %v596_v22 = vsel %vm594_vm12, %v692_v42, %v595_v45 }
 0x167   :  { %v600_v47 = vsel %vm593_vm13, %v596_v22, %v599_v46 }
 0x168   :  { %v601_v48 = vsel %vm590_vm14, nan, %v600_v47 }
 0x169   :  { %602 = vst [vmem:[#allocation7] sm:$0xff] %v601_v48 }
 0x16a   :  { %750 = shalt.err (!%p747_p6)
}
 0x16b   :  { %s751_s13 = scalar_lea.hbm %s867_s3, 128 }
 0x16c   :  { %p752_p7 = scmp.ne.s32.totalorder %s867_s3, %s751_s13  ;;  %p755_p8 = scmp.lt.u32.totalorder %s751_s13, %s867_s3 }
 0x16e   :  { %p757_p9 = pnand %p755_p8, %p752_p7 }
 0x170   :  { %760 = shalt.err (!%p757_p9)
}
 0x171   :  { %612 = dma.vmem_to_hbm [thread:$0]  %s610_s9, 128, %s867_s3, [#allocation4]  }
 0x172   :  { %765 = dma.done.wait [#allocation4], 128  }
 0x173   :  { %766 = vsyncadd [#allocation4], 4294967168 }
 0x174   :  { %616 = vsyncpa [#allocation3], 1 }
 0x175   :  { %617 = vsyncpa [#allocation6], 1 }
 0x176   :  { %618 = vsyncpa [#allocation4], 1 }

</bundles_post_ra>
